<compile_context>
chip_gen: v5e
topology: v5e:2x2
jax: 0.10.0
libtpu: 0.0.40
codegen_flags: <defaults>
</compile_context>

<pallas_src>
import functools

import numpy as np
import jax
import jax.numpy as jnp
from jax.experimental import pallas as pl
from jax.experimental.pallas import tpu as pltpu

_LANE = 128
_SUBLANE = 8
_VMEM_LIMIT_BYTES = 48 * 1024 * 1024   # < v7x's 64 MiB physical VMEM
_TB_BUDGET_BYTES = 24 * 1024 * 1024    # budget for streamed tiles + temporaries
_TB_MAX = 4096                         # step work >> 0.35 us grid-step overhead


def _round_up(n, m):
    return ((n + m - 1) // m) * m


def _default_use_bf16():
    # bf16 EUP/VPU exist on v6e / v7x; on v5e bf16 transcendentals regress
    # (emulated), so keep f32 there.  Detection failure -> safe f32 path.
    try:
        kind = jax.devices()[0].device_kind.lower()
    except Exception:
        return False
    return ("v6" in kind) or ("v7" in kind)


def _softplus10(h, use_bf16):
    # PyTorch Softplus(beta=10, threshold=20): if 10*h > 20 -> h (linear),
    # else log1p(exp(10*h)) / 10.  jnp.minimum guards exp overflow in the
    # unselected branch.
    z = 10.0 * h
    zc = jnp.minimum(z, 20.0)
    if use_bf16:
        # Only the transcendentals (the binding EUP slot) run in bf16; the
        # branch decision and the linear branch stay exact f32.
        sp = jnp.log1p(jnp.exp(zc.astype(jnp.bfloat16))).astype(jnp.float32) / 10.0
    else:
        sp = jnp.log1p(jnp.exp(zc)) / 10.0
    return jnp.where(z > 20.0, h, sp)


def _kernel_reduce(x_ref, b1_ref, b2row_ref, o_ref, *, use_bf16):
    """S == 1: second layer is a VPU multiply + lane reduce (no N=1 MXU op)."""
    h = jnp.dot(x_ref[...], b1_ref[...], preferred_element_type=jnp.float32)
    x1 = _softplus10(h, use_bf16)
    o_ref[...] = jnp.sum(x1 * b2row_ref[...], axis=-1, keepdims=True)


def _kernel_matmul(x_ref, b1_ref, b2_ref, o_ref, *, use_bf16):
    """S stacked second-layer prior draws: real (Hp, Sp) MXU matmul."""
    h = jnp.dot(x_ref[...], b1_ref[...], preferred_element_type=jnp.float32)
    x1 = _softplus10(h, use_bf16)
    o_ref[...] = jnp.dot(x1, b2_ref[...], preferred_element_type=jnp.float32)


def predictor_wide_prior(x, beta1, beta2, mask, *, block_b=None,
                         use_bf16_softplus=None, compact=True):
    """Fused forward of Predictor_wide_Prior.

    x     : (B, F) float32
    beta1 : (F, H) Gaussian prior draw
    beta2 : (H,) / (H, 1) / (H, S) second-layer prior draw(s)
    mask  : (H,) / (H, 1) / (H, S) Bernoulli identity mask(s)
    returns (B, S) float32   (S = 1 reproduces the module forward exactly)
    """
    x = jnp.asarray(x, jnp.float32)
    beta1 = jnp.asarray(beta1, jnp.float32)
    beta2 = jnp.asarray(beta2, jnp.float32)
    mask = jnp.asarray(mask, jnp.float32)
    if beta2.ndim == 1:
        beta2 = beta2[:, None]
    if mask.ndim == 1:
        mask = mask[:, None]

    if use_bf16_softplus is None:
        use_bf16_softplus = _default_use_bf16()

    # Fold the Bernoulli identity into beta2: (x1 * m) @ b2 == x1 @ (m * b2).
    b2m = beta2 * mask

    B, F = x.shape
    H, S = b2m.shape
    assert beta1.shape == (F, H), (beta1.shape, F, H)

    # S == 1: masked-out hidden units contribute exactly zero -> compact them
    # away on the host (only possible with concrete, non-traced weights).
    if compact and S == 1:
        try:
            b2_host = np.asarray(b2m[:, 0])
        except Exception:            # traced under jit -> skip compaction
            b2_host = None
        if b2_host is not None:
            keep = np.nonzero(b2_host != 0.0)[0]
            if keep.size == 0:
                return jnp.zeros((B, 1), jnp.float32)
            if keep.size < H:
                keep_j = jnp.asarray(keep, jnp.int32)
                beta1 = jnp.take(beta1, keep_j, axis=1)
                b2m = jnp.take(b2m, keep_j, axis=0)
                H = int(keep.size)

    # Pad hidden dim to a lane multiple: softplus(0)=log(2)/10 on padded
    # columns is cancelled by the matching zero beta2 rows.
    Hp = _round_up(H, _LANE)
    if Hp != H:
        beta1 = jnp.pad(beta1, ((0, 0), (0, Hp - H)))
        b2m = jnp.pad(b2m, ((0, Hp - H), (0, 0)))

    # Lane-dense output: for 1 < S < 128, pad S so output stores are full
    # width (no masked vst.msk); sliced back after the call.
    Sp = S
    if S > 1 and S % _LANE != 0:
        Sp = _round_up(S, _LANE)
        b2m = jnp.pad(b2m, ((0, 0), (0, Sp - S)))

    # Batch tile from a VMEM budget.  No host pad of x: grid = cdiv(B, TB);
    # the partial last tile only feeds per-row math and its output rows are
    # clipped (do not add cross-row reductions to the kernel).
    if block_b is None:
        per_row = 4 * (2 * F + 2 * Sp + 4 * Hp)     # dbl-buffered x/out + temps
        tb = max(_SUBLANE, (_TB_BUDGET_BYTES // per_row) // _SUBLANE * _SUBLANE)
        tb = min(tb, _TB_MAX)
    else:
        tb = max(_SUBLANE, (int(block_b) // _SUBLANE) * _SUBLANE)
    TB = B if tb >= B else tb                       # full-dim block if tiny B
    grid = (pl.cdiv(B, TB),)

    if Sp == 1:
        kernel = functools.partial(_kernel_reduce, use_bf16=use_bf16_softplus)
        b2_arg = b2m.T                                       # (1, Hp) row
        b2_spec = pl.BlockSpec((1, Hp), lambda i: (0, 0))
    else:
        kernel = functools.partial(_kernel_matmul, use_bf16=use_bf16_softplus)
        b2_arg = b2m                                         # (Hp, Sp)
        b2_spec = pl.BlockSpec((Hp, Sp), lambda i: (0, 0))

    cost = pl.CostEstimate(
        flops=int(2 * B * Hp * (F + Sp)),
        transcendentals=int(2 * B * Hp),
        bytes_accessed=int(4 * (B * F + B * Sp + F * Hp + Hp * Sp)),
    )

    out = pl.pallas_call(
        kernel,
        out_shape=jax.ShapeDtypeStruct((B, Sp), jnp.float32),
        grid=grid,
        in_specs=[
            pl.BlockSpec((TB, F), lambda i: (i, 0)),   # streamed batch tiles
            # Constant-index weight blocks: the pipeline only DMAs them once.
            # TODO(synk): single-buffer them (pipeline_mode=pl.Buffered(1))
            # once confirmed on the deployed JAX; at these weight sizes the
            # duplicate buffer is negligible, so correctness/robustness wins.
            pl.BlockSpec((F, Hp), lambda i: (0, 0)),
            b2_spec,
        ],
        out_specs=pl.BlockSpec((TB, Sp), lambda i: (i, 0)),
        compiler_params=pltpu.CompilerParams(
            dimension_semantics=("parallel",),         # megacore / 2-TC shard
            vmem_limit_bytes=_VMEM_LIMIT_BYTES,
        ),
        cost_estimate=cost,
    )(x, beta1, b2_arg)

    if Sp != S:
        out = out[:, :S]
    return out


def reference_forward(x, beta1, beta2, mask):
    """Pure-JAX reference mirroring the PyTorch forward."""
    if beta2.ndim == 1:
        beta2 = beta2[:, None]
    if mask.ndim == 1:
        mask = mask[:, None]
    h = jnp.dot(x, beta1, precision=jax.lax.Precision.HIGHEST)
    x1 = _softplus10(h, use_bf16=False)
    return jnp.dot(x1, beta2 * mask, precision=jax.lax.Precision.HIGHEST)


if __name__ == "__main__":
    scale = 0.1
    prob = 0.1

    key = jax.random.PRNGKey(0)
    (kx, kb1a, kb2a, kma, kb1b, kb2b, kmb, kb1c, kb2c, kmc) = jax.random.split(key, 10)

    # (1) Module-faithful forward: F=32, H=100 (module default), single beta2
    #     column + Bernoulli identity mask.  B=12 with block_b=8 exercises the
    #     un-padded partial last batch tile (cdiv grid, clipped writes).
    B, F, H = 12, 32, 100
    x = jax.random.normal(kx, (B, F), dtype=jnp.float32)
    beta1 = jax.random.normal(kb1a, (F, H), dtype=jnp.float32) * scale
    beta2 = jax.random.normal(kb2a, (H, 1), dtype=jnp.float32) * scale
    mask = jax.random.bernoulli(kma, p=prob, shape=(H, 1)).astype(jnp.float32)
    ref1 = reference_forward(x, beta1, beta2, mask)

    out1 = jax.block_until_ready(
        predictor_wide_prior(x, beta1, beta2, mask, block_b=8,
                             use_bf16_softplus=False, compact=True))
    assert out1.shape == (B, 1), out1.shape
    assert jnp.allclose(out1, ref1, atol=1e-5, rtol=1e-5)

    # (1b) Same inputs, no host-side compaction: exercises H=100 -> 128 lane
    #      padding with live masked rows and the auto (VMEM-derived) tile.
    out1b = jax.block_until_ready(
        predictor_wide_prior(x, beta1, beta2, mask,
                             use_bf16_softplus=False, compact=False))
    assert jnp.allclose(out1b, ref1, atol=1e-5, rtol=1e-5)

    # (2) S stacked second-layer prior draws in one call: lane-dense (B, S)
    #     output and a real MXU matmul for layer 2.
    H2, S2 = 128, 128
    beta1_b = jax.random.normal(kb1b, (F, H2), dtype=jnp.float32) * scale
    beta2_b = jax.random.normal(kb2b, (H2, S2), dtype=jnp.float32) * scale
    mask_b = jax.random.bernoulli(kmb, p=prob, shape=(H2, S2)).astype(jnp.float32)
    out2 = jax.block_until_ready(
        predictor_wide_prior(x, beta1_b, beta2_b, mask_b, use_bf16_softplus=False))
    ref2 = reference_forward(x, beta1_b, beta2_b, mask_b)
    assert out2.shape == (B, S2), out2.shape
    assert jnp.allclose(out2, ref2, atol=1e-5, rtol=1e-5)

    # (3) 1 < S < 128: S padded to lane width inside the wrapper, sliced back.
    H3, S3 = 64, 16
    beta1_c = jax.random.normal(kb1c, (F, H3), dtype=jnp.float32) * scale
    beta2_c = jax.random.normal(kb2c, (H3, S3), dtype=jnp.float32) * scale
    mask_c = jax.random.bernoulli(kmc, p=prob, shape=(H3, S3)).astype(jnp.float32)
    out3 = jax.block_until_ready(
        predictor_wide_prior(x, beta1_c, beta2_c, mask_c, use_bf16_softplus=False))
    ref3 = reference_forward(x, beta1_c, beta2_c, mask_c)
    assert out3.shape == (B, S3), out3.shape
    assert jnp.allclose(out3, ref3, atol=1e-5, rtol=1e-5)

    # (4) bf16 transcendental path (only on v6e/v7x, per-generation advice;
    #     v5e keeps f32 transcendentals).
    if _default_use_bf16():
        out4 = jax.block_until_ready(
            predictor_wide_prior(x, beta1, beta2, mask,
                                 use_bf16_softplus=True, compact=True))
        assert jnp.allclose(out4, ref1, atol=5e-3, rtol=5e-2)

    print("KERNEL_OK")
</pallas_src>

<mosaic_0001>
module attributes {stable_mosaic.version = 11 : i64} {
  func.func @_kernel_reduce(%arg0: i32, %arg1: memref<8x32xf32, #tpu.memory_space<vmem>>, %arg2: memref<32x128xf32, #tpu.memory_space<vmem>>, %arg3: memref<1x128xf32, #tpu.memory_space<vmem>>, %arg4: memref<8x1xf32, #tpu.memory_space<vmem>>) attributes {dimension_semantics = [#tpu.dimension_semantics<parallel>], iteration_bounds = array<i64: 2>, scalar_prefetch = 0 : i64, scratch_operands = 0 : i64, tpu.core_type = #tpu.core_type<tc>, window_params = [{transform_indices = @transform_0, window_bounds = array<i64: 8, 32>}, {pipeline_mode = #tpu.pipeline_mode<synchronous>, transform_indices = @transform_1, window_bounds = array<i64: 32, 128>}, {pipeline_mode = #tpu.pipeline_mode<synchronous>, transform_indices = @transform_2, window_bounds = array<i64: 1, 128>}, {transform_indices = @transform_3, window_bounds = array<i64: 8, 1>}]} {
    %c0 = arith.constant 0 : index
    %c0_0 = arith.constant 0 : index
    %0 = vector.load %arg1[%c0, %c0_0] : memref<8x32xf32, #tpu.memory_space<vmem>>, vector<8x32xf32>
    %c0_1 = arith.constant 0 : index
    %c0_2 = arith.constant 0 : index
    %1 = vector.load %arg2[%c0_1, %c0_2] : memref<32x128xf32, #tpu.memory_space<vmem>>, vector<32x128xf32>
    %cst = arith.constant dense<0.000000e+00> : vector<8x128xf32>
    %2 = tpu.matmul %0, %1, %cst {dimension_numbers = #tpu.dot_dimension_numbers<[1], [0], [0], [1], [0, 0, 1, 1], [], []>} : vector<8x32xf32>, vector<32x128xf32>, vector<8x128xf32> -> vector<8x128xf32>
    %cst_3 = arith.constant 1.000000e+01 : f32
    %3 = vector.broadcast %cst_3 : f32 to vector<8x128xf32>
    %4 = arith.mulf %3, %2 : vector<8x128xf32>
    %cst_4 = arith.constant 2.000000e+01 : f32
    %5 = vector.broadcast %cst_4 : f32 to vector<8x128xf32>
    %6 = arith.minimumf %4, %5 : vector<8x128xf32>
    %7 = math.exp %6 : vector<8x128xf32>
    %8 = math.log1p %7 : vector<8x128xf32>
    %cst_5 = arith.constant 1.000000e+01 : f32
    %9 = vector.broadcast %cst_5 : f32 to vector<8x128xf32>
    %10 = arith.divf %8, %9 : vector<8x128xf32>
    %cst_6 = arith.constant 2.000000e+01 : f32
    %11 = vector.broadcast %cst_6 : f32 to vector<8x128xf32>
    %12 = arith.cmpf ogt, %4, %11 : vector<8x128xf32>
    %13 = arith.select %12, %2, %10 : vector<8x128xi1>, vector<8x128xf32>
    %c0_7 = arith.constant 0 : index
    %c0_8 = arith.constant 0 : index
    %14 = vector.load %arg3[%c0_7, %c0_8] : memref<1x128xf32, #tpu.memory_space<vmem>>, vector<1x128xf32>
    %15 = vector.broadcast %14 : vector<1x128xf32> to vector<8x128xf32>
    %16 = arith.mulf %13, %15 : vector<8x128xf32>
    %cst_9 = arith.constant dense<0.000000e+00> : vector<8xf32>
    %17 = vector.multi_reduction <add>, %16, %cst_9 [1] : vector<8x128xf32> to vector<8xf32>
    %18 = vector.shape_cast %17 : vector<8xf32> to vector<8x1xf32>
    %c0_10 = arith.constant 0 : index
    %c0_11 = arith.constant 0 : index
    %19 = vector.load %arg4[%c0_10, %c0_11] : memref<8x1xf32, #tpu.memory_space<vmem>>, vector<8x1xf32>
    tpu.vector_store %arg4[%c0_10, %c0_11], %18 {strides = array<i32>} : memref<8x1xf32, #tpu.memory_space<vmem>>, vector<8x1xf32>,
    return
  }
  func.func @transform_0(%arg0: i32) -> (i32, i32) {
    %c0_i32 = arith.constant 0 : i32
    %c0_i32_0 = arith.constant 0 : i32
    return %arg0, %c0_i32 : i32, i32
  }
  func.func @transform_1(%arg0: i32) -> (i32, i32) {
    %c0_i32 = arith.constant 0 : i32
    %c0_i32_0 = arith.constant 0 : i32
    %c0_i32_1 = arith.constant 0 : i32
    return %c0_i32, %c0_i32_0 : i32, i32
  }
  func.func @transform_2(%arg0: i32) -> (i32, i32) {
    %c0_i32 = arith.constant 0 : i32
    %c0_i32_0 = arith.constant 0 : i32
    %c0_i32_1 = arith.constant 0 : i32
    return %c0_i32, %c0_i32_0 : i32, i32
  }
  func.func @transform_3(%arg0: i32) -> (i32, i32) {
    %c0_i32 = arith.constant 0 : i32
    %c0_i32_0 = arith.constant 0 : i32
    return %arg0, %c0_i32 : i32, i32
  }
}

</mosaic_0001>

<bundles_post_ra>
// kernel: tpu_custom_call.1
= control target key start
LH: loop header
LB: loop body
LE: loop exit
PB: predicated region body
PF: predicated region fallthrough
CT: control target
= control target key end

     0   :  { %8 = vsyncpa [#allocation3], 0  ;;  %s644_s0 = inlined_call_operand.hbm [shape: f32[12,32], index: 0, kind: input, shape index: {}]   ;;  %s645_s1 = inlined_call_operand.hbm [shape: f32[32,128], index: 1, kind: input, shape index: {}]   ;;  %s646_s2 = inlined_call_operand.vmem [shape: f32[1,128], index: 2, kind: input, shape index: {}]   ;;  %s647_s3 = inlined_call_operand.vmem [shape: f32[12,1], index: 3, kind: output, shape index: {}]  }
   0x1   :  { %10 = vsyncpa [#allocation3 + $0x1], 0 }
   0x2   :  { %11 = vsyncpa [#allocation5], 0  ;;  %s538_s12 = smov 0   ;;  %s540_s13 = smov 0  }
   0x3   :  { %s542_s14 = smov 0   ;;  %s544_s15 = smov 0  }
   0x4 LB: > { %s127_s18 = sshll.u32 %s645_s1, 4  ;;  %s560_s19 = sadd.s32 4294967295, %s512_s15   ;;  %s512_s15 = sphi %s544_s15, %s654_s15   ;;  %s508_s14 = sphi %s542_s14, %s653_s14   ;;  %s504_s13 = sphi %s540_s13, %s652_s13   ;;  %s500_s12 = sphi %s538_s12, %s651_s12   ;;  %s128_s18 = int_to_ptr.hbm [resolvable:$true] %s127_s18 }
   0x5   : > { %p342_p0 = scmp.ge.s32.totalorder %s512_s15, 1  ;;  %p38_p1 = scmp.eq.s32.totalorder %s560_s19, 0 }
   0x6   : > { %p116_p2 = scmp.lt.s32.totalorder %s512_s15, 3  ;;  %s514_s21 = smov [#allocation4]  }
   0x7   : > { %s129_s22 = sshll.u32 %s514_s21, 4  ;;  %s515_s23 = smov 128   ;;  %s130_s22 = int_to_ptr.vmem [resolvable:$true] %s129_s22 }
   0x8   : > { %p565_p3 = pnand %p342_p0, %p116_p2  ;;  %s516_s24 = smov 8  }
   0x9   : > { %s574_s25 = sadd.s32 1, %s512_s15   ;;  %s24_s27 = sadd.s32 1, %s508_s14 }
   0xa   : > { %p360_p4 = pneg %p565_p3  ;;  %s21_s26 = ssub.s32 %s512_s15, %s574_s25 }
   0xb   : > { %p22_p6 = scmp.eq.s32.totalorder %s21_s26, 0  ;;  %p31_p7 = scmp.ne.s32.totalorder %s508_s14, %s504_s13 }
   0xc   : > { %p361_p5 = pnand %p360_p4, %p38_p1  ;;  %p32_p8 = scmp.eq.s32.totalorder %s512_s15, 0 }
   0xd   : > { %p37_p9 = scmp.ne.s32.totalorder %s504_s13, %s500_s12  ;;  %p369_p12 = scmp.lt.s32.totalorder %s512_s15, 2 }
   0xe   : > { %363 = dma.hbm_to_vmem [thread:$0]  (!%p361_p5), %s128_s18, 512, %s130_s22, [#allocation5], %s515_s23, %s515_s23, %s516_s24  }
   0xf   : > { %s584_s28 = scalar_select %p22_p6, %s508_s14, %s24_s27  }
  0x10   : > { %p33_p10 = por %p32_p8, %p31_p7  ;;  %p588_p11 = por %p38_p1, %p37_p9 }
  0x11   : > { %s146_s30 = sand.u32 1, %s508_s14   ;;  %s346_s5 = sshll.u32 %s512_s15, 3 }
  0x12   : > { %s345_s4 = sshll.u32 %s146_s30, 3  ;;  %s154_s8 = scalar_lea.hbm %s644_s0, %s346_s5 }
  0x13   : > { %s150_s9 = scalar_lea.vmem [#allocation2], %s345_s4  ;;  %s156_s11 = sshll.u32 %s154_s8, 4  ;;  %s157_s11 = int_to_ptr.hbm [resolvable:$true] %s156_s11 }
  0x14   : > { %s158_s10 = sshll.u32 %s150_s9, 4  ;;  %p598_p13 = pnand %p369_p12, %p33_p10  ;;  %s159_s10 = int_to_ptr.vmem [resolvable:$true] %s158_s10 }
  0x15   : > { %s147_s16 = scalar_lea.sflag [#allocation3], %s146_s30  ;;  %s444_s17 = sshra.s32 %s157_s11, 4  ;;  %s445_s17 = int_to_ptr.hbm [resolvable:$true] %s444_s17 }
  0x16   : > { %s446_s18 = scalar_lea.hbm %s445_s17, 8  ;;  %p448_p2 = pneg %p598_p13 }
  0x17   : > { %p447_p0 = scmp.ne.s32.totalorder %s445_s17, %s446_s18  ;;  %s451_s22 = scalar_lea.hbm %s644_s0, 16 }
  0x18   : > { %p452_p6 = scmp.lt.s32.totalorder %s445_s17, %s644_s0  ;;  %p453_p7 = scmp.lt.s32.totalorder %s451_s22, %s446_s18 }
  0x19   : > { %p449_p4 = pnand %p448_p2, %p447_p0 }
  0x1a   : > { %p454_p8 = por %p453_p7, %p452_p6 }
  0x1b   : > { %p450_p5 = pneg %p449_p4 }
  0x1d   : > { %p455_p9 = pnand %p454_p8, %p450_p5 }
  0x1f   : > { %458 = shalt.err (!%p455_p9)
}
  0x20   : > { %367 = dma.hbm_to_vmem [thread:$0]  (!%p598_p13), %s157_s11, 128, %s159_s10, %s147_s16  }
  0x21   : > { %167 = sbr.rel (%p565_p3) target bundleno = 322 (0x142), region = 32  ;;  %s169_s26 = sand.u32 (!%p565_p3), 1, %s504_s13  }
  0x22   : > { %s348_s27 = sshll.u32 (!%p565_p3), %s169_s26, 3  ;;  %s170_s30 = scalar_lea.sflag (!%p565_p3), [#allocation3], %s169_s26 }
  0x23   : > { %s173_s4 = scalar_lea.vmem (!%p565_p3), [#allocation2], %s348_s27 }
  0x26   : > { %491 = dma.done.wait (%p588_p11), %s170_s30, 128  }
  0x27   : > { %493 = vsyncadd (%p588_p11), %s170_s30, 4294967168 }
  0x28   : > { %495 = dma.done.wait (%p38_p1), [#allocation5], 512  }
  0x29   : > { %497 = vsyncadd (%p38_p1), [#allocation5], 4294966784  ;;  %v209_v0 = vld [vmem:[#allocation4 + $0x18] sm:$0xff]  ;;  %v208_v1 = vld [vmem:[#allocation4 + $0x10] sm:$0xff]  ;;  %vm210_vm0 = vcmask 261120   ;;  %v517_v5 = vmov 10.0  }
  0x2a   : > { %226 = vmatpush.msra.mxu0 %v209_v0  ;;  %v207_v2 = vld [vmem:[#allocation4 + $0x8] sm:$0xff]  ;;  %v206_v3 = vld [vmem:[#allocation4] sm:$0xff]  ;;  %v205_v4 = vld [vmem:[%s173_s4] sm:$0xff]  ;;  %408 = vrcp.f32 %v517_v5  ;;  %p201_p1 = scmp.lt.s32.totalorder %s560_s19, 1  ;;  %vm264_vm4 = vcmask 7168  }
  0x2b   : > { %v407_v25 = vld [vmem:[%s646_s2] ss:$0 sm:$0xff] }
  0x2c   : > { %227 = vmatpush.msra.mxu0 %v208_v1  ;;  %s656_s19 = smov (!%p201_p1, %s560_s19), 1 }
  0x2d   : > { %s350_s5 = sshll.u32 %s656_s19, 3 }
  0x2e   : > { %228 = vmatpush.msra.mxu0 %v207_v2  ;;  %s204_s8 = scalar_lea.vmem %s647_s3, %s350_s5 }
  0x30   : > { %229 = vmatpush.msra.mxu0 %v206_v3  ;;  %v409_v9 = vpop.eup %408 }
  0x31   : > { %351 = vmatmul.msk.f32.vlgmr.msra.gmra.mxu0 %vm210_vm0, %v205_v4  ;;  %v248_v11 = vmul.f32 10.0, %v409_v9  ;;  %vm252_vm1 = vweird.f32 %v409_v9 }
  0x33   : > { %v249_v12 = vsub.f32 1.0, %v248_v11 }
  0x35   : > { %v250_v16 = vmul.f32 %v409_v9, %v249_v12 }
  0x37   : > { %v251_v18 = vadd.f32 %v409_v9, %v250_v16 }
  0x39   : > { %v253_v23 = vsel %vm252_vm1, %v409_v9, %v251_v18 }
  0xae   : > { %v231_v6 = vpop.f32.mrf.mxu0 }
  0xaf   : > { %v234_v7 = vmul.f32 10.0, %v231_v6 }
  0xb1   : > { %v235_v8 = vmin.f32 %v234_v7, 20.0  ;;  %vm255_vm3 = vcmp.gt.f32.partialorder %v234_v7, 20.0 }
  0xb3   : > { %v236_v10 = vmul.f32 1.442695, %v235_v8 }
  0xb5   : > { %410 = vpow2.f32 %v236_v10 }
  0xbb   : > { %v411_v13 = vpop.eup %410 }
  0xbc   : > { %v238_v14 = vadd.f32 1.0, %v411_v13  ;;  %v241_v15 = vmul.f32 -0.5, %v411_v13  ;;  %v244_v19 = vand.u32 2147483647, %v411_v13 }
  0xbe   : > { %412 = vlog2.f32 %v238_v14  ;;  %v242_v17 = vadd.f32 1.0, %v241_v15  ;;  %vm245_vm2 = vcmp.lt.f32.partialorder %v244_v19, 0.0004427343 }
  0xc0   : > { %v243_v22 = vmul.f32 %v411_v13, %v242_v17 }
  0xc4   : > { %v413_v20 = vpop.eup %412 }
  0xc5   : > { %v240_v21 = vmul.f32 0.6931472, %v413_v20 }
  0xc7   : > { %v246_v24 = vsel %vm245_vm2, %v243_v22, %v240_v21 }
  0xc8   : > { %v254_v26 = vmul.f32 %v253_v23, %v246_v24 }
  0xca   : > { %v256_v27 = vsel %vm255_vm3, %v231_v6, %v254_v26 }
  0xcb   : > { %v261_v28 = vmul.f32 %v407_v25, %v256_v27 }
  0xcd   : > { %262 = vadd.xlane.f32.xlu0 %v261_v28 }
 0x140   : > { %v263_v29 = vpop.xlane.xlu0 %262 }
 0x141   : > { %265 = vst.msk [vmem:[%s204_s8] sm:$0xff] %vm264_vm4, %v263_v29 }
 0x142 PF: > { %p14_p3 = scmp.ge.s32.totalorder %s574_s25, 4   ;;  %s651_s12 = smov %s504_s13 }
 0x143   : > { %s652_s13 = smov %s508_s14  ;;  %s653_s14 = smov %s584_s28 }
 0x144   : > { %s654_s15 = smov %s574_s25  ;;  %16 = sbr.rel (!%p14_p3) target bundleno = 4 (0x4), region = 76 }
 0x149   :  { %285 = vsyncpa [#allocation3], 1 }
 0x14a   :  { %287 = vsyncpa [#allocation3 + $0x1], 1 }
 0x14b   :  { %288 = vsyncpa [#allocation5], 1 }

</bundles_post_ra>
